<compile_context>
chip_gen: v7x
topology: tpu7x:2x2x1
jax: 0.10.0
libtpu: 0.0.40
codegen_flags: <defaults>
</compile_context>

<pallas_src>
import functools

import jax
import jax.numpy as jnp
from jax.experimental import pallas as pl
from jax.experimental.pallas import tpu as pltpu

_INV_SQRT2 = 0.7071067811865476  # exact-erf GELU constant (torch.nn.GELU default)


def _ffn_kernel(x_ref, w1_ref, b1_ref, w2_ref, b2_ref, o_ref, *, gelu_tanh=False):
    # x_ref : (TM, dim_p)      original activation dtype (cast in-kernel, hides under MXU)
    # w1_ref: (dim_p, hid_p)   compute dtype, VMEM-resident, single-buffered
    # b1_ref: (1, hid_p)       f32
    # w2_ref: (hid_p, dim_p)   compute dtype, VMEM-resident, single-buffered
    # b2_ref: (1, dim_p)       f32
    # o_ref : (TM, dim_p)      original activation dtype
    x = x_ref[...].astype(w1_ref.dtype)

    # First GEMM on the MXU, f32 accumulation; bias + GELU stay on the f32 accumulator.
    h = jnp.dot(x, w1_ref[...], preferred_element_type=jnp.float32)
    h = h + b1_ref[...]
    if gelu_tanh:
        h = jax.nn.gelu(h, approximate=True)        # tanh form -> EUP slot on v6e/v7x
    else:
        h = 0.5 * h * (1.0 + jax.lax.erf(h * _INV_SQRT2))

    # Second GEMM: cast activations back to the weight dtype for full MXU throughput.
    o = jnp.dot(h.astype(w2_ref.dtype), w2_ref[...], preferred_element_type=jnp.float32)
    o = o + b2_ref[...]
    o_ref[...] = o.astype(o_ref.dtype)


def _round_up(v, m):
    return (v + m - 1) // m * m


def _vmem_capacity_bytes():
    try:
        cap = getattr(pltpu.get_tpu_info(), "vmem_capacity_bytes", None)
        if cap:
            return int(cap)
    except Exception:
        pass
    return 64 << 20  # conservative fallback (v7x per-TC VMEM)


def _estimate_vmem(tm, dim_p, hid_p, wb, xb, ob):
    est = 2 * dim_p * hid_p * wb          # w1 + w2 (single-buffered, resident)
    est += (hid_p + dim_p) * 4            # biases (f32, single-buffered)
    est += 2 * tm * dim_p * (xb + ob)     # double-buffered x / out tiles
    est += tm * hid_p * (4 + wb)          # f32 h + compute-dtype copy of h
    est += tm * dim_p * (4 + wb)          # f32 out accumulator + compute-dtype x copy
    return est


def _pick_tm(m, block_m):
    tm = max(16, _round_up(min(block_m, m), 16))
    # Prefer >= 4 grid steps (pipelining + both v7x TensorCores) when m allows, else >= 2.
    if m >= 4 * 16:
        min_tiles = 4
    elif m >= 2 * 16:
        min_tiles = 2
    else:
        min_tiles = 1
    while tm > 16 and -(-m // tm) < min_tiles:
        tm = max(16, _round_up(tm // 2, 16))
    return tm


def _maybe_pad2d(a, rows, cols):
    pr, pc = rows - a.shape[0], cols - a.shape[1]
    if pr == 0 and pc == 0:
        return a
    return jnp.pad(a, ((0, pr), (0, pc)))


def _prep_bias(b, n_p):
    if b.dtype != jnp.float32:
        b = b.astype(jnp.float32)
    if b.ndim == 1:
        if b.shape[0] != n_p:
            b = jnp.pad(b, (0, n_p - b.shape[0]))
        b = b.reshape(1, n_p)
    return b


def prepare_params(w1, b1, w2, b2, compute_dtype=jnp.bfloat16):
    """Hoist the per-call weight cast + 128-pad out of the forward path (do once at init)."""
    compute_dtype = jnp.dtype(compute_dtype)
    dim, hidden = w1.shape
    dim_p, hid_p = _round_up(dim, 128), _round_up(hidden, 128)
    w1_p = _maybe_pad2d(w1.astype(compute_dtype), dim_p, hid_p)
    w2_p = _maybe_pad2d(w2.astype(compute_dtype), hid_p, dim_p)
    b1_p = _prep_bias(b1, hid_p)
    b2_p = _prep_bias(b2, dim_p)
    return w1_p, b1_p, w2_p, b2_p


@functools.partial(jax.jit, static_argnames=("block_m", "compute_dtype", "gelu_tanh"))
def feed_forward(x, w1, b1, w2, b2, *, block_m=256, compute_dtype=jnp.bfloat16,
                 gelu_tanh=False):
    """x: (batch, seq, dim). Returns (batch, seq, dim) in x.dtype.

    block_m:       upper bound on the M-tile size (auto-shrunk for pipelining / VMEM).
    compute_dtype: dtype of the matmul operands (bf16 default = full MXU rate); accumulation
                   is always f32. Pass jnp.float32 for the exact path.
    gelu_tanh:     use tanh-approximate GELU (EUP) instead of exact erf (VPU polynomial).
    """
    orig_dtype = x.dtype
    compute_dtype = jnp.dtype(compute_dtype)

    batch, seq, dim = x.shape
    m = batch * seq

    # Lane-dense padding targets (last dims multiples of 128). Weights may already be pre-padded.
    dim_p = _round_up(dim, 128)
    hid_p = _round_up(w1.shape[1], 128)

    # TM: sublane-aligned, long-enough grid for pipelining/megacore, fits the VMEM budget.
    wb = compute_dtype.itemsize
    xb = jnp.dtype(orig_dtype).itemsize
    ob = xb
    vmem_cap = _vmem_capacity_bytes()
    budget_cap = int(vmem_cap * 3 // 4)
    tm = _pick_tm(m, block_m)
    while tm > 16 and _estimate_vmem(tm, dim_p, hid_p, wb, xb, ob) + (4 << 20) > budget_cap:
        tm = max(16, _round_up(tm // 2, 16))
    m_p = _round_up(m, tm)
    vmem_budget = int(min(max(_estimate_vmem(tm, dim_p, hid_p, wb, xb, ob) + (4 << 20),
                              16 << 20), budget_cap))

    # Wrapper-side layout plumbing: flatten; pad/cast only if actually needed (no x cast here —
    # the per-tile cast happens in-kernel and hides under the MXU).
    x2d = x.reshape(m, dim)
    x2d = _maybe_pad2d(x2d, m_p, dim_p)
    w1_p = _maybe_pad2d(w1 if w1.dtype == compute_dtype else w1.astype(compute_dtype),
                        dim_p, hid_p)
    w2_p = _maybe_pad2d(w2 if w2.dtype == compute_dtype else w2.astype(compute_dtype),
                        hid_p, dim_p)
    b1_p = _prep_bias(b1, hid_p)
    b2_p = _prep_bias(b2, dim_p)

    grid = (m_p // tm,)
    resident = functools.partial(pl.BlockSpec, pipeline_mode=pl.Buffered(1))

    out2d = pl.pallas_call(
        functools.partial(_ffn_kernel, gelu_tanh=gelu_tanh),
        out_shape=jax.ShapeDtypeStruct((m_p, dim_p), orig_dtype),
        grid=grid,
        in_specs=[
            pl.BlockSpec((tm, dim_p), lambda i: (i, 0)),        # x tile, streams over M
            resident((dim_p, hid_p), lambda i: (0, 0)),         # w1, resident, single-buffered
            resident((1, hid_p), lambda i: (0, 0)),             # b1
            resident((hid_p, dim_p), lambda i: (0, 0)),         # w2, resident, single-buffered
            resident((1, dim_p), lambda i: (0, 0)),             # b2
        ],
        out_specs=pl.BlockSpec((tm, dim_p), lambda i: (i, 0)),  # out tile, streams over M
        compiler_params=pltpu.CompilerParams(
            dimension_semantics=("parallel",),                  # megacore sharding on v7x
            vmem_limit_bytes=vmem_budget,
        ),
    )(x2d, w1_p, b1_p, w2_p, b2_p)

    return out2d[:m, :dim].reshape(batch, seq, dim)


def init_params(key, dim, hidden_dim, dtype=jnp.float32):
    """Deterministic synthetic init mirroring nn.Linear parameter shapes."""
    k1, k2, k3, k4 = jax.random.split(key, 4)
    # torch nn.Linear stores weight as (out, in); we keep (in, out) for x @ W.
    lim1 = 1.0 / jnp.sqrt(dim)
    lim2 = 1.0 / jnp.sqrt(hidden_dim)
    w1 = jax.random.uniform(k1, (dim, hidden_dim), dtype, -lim1, lim1)
    b1 = jax.random.uniform(k2, (hidden_dim,), dtype, -lim1, lim1)
    w2 = jax.random.uniform(k3, (hidden_dim, dim), dtype, -lim2, lim2)
    b2 = jax.random.uniform(k4, (dim,), dtype, -lim2, lim2)
    return w1, b1, w2, b2


def _ref_ffn(x, w1, b1, w2, b2):
    h = x @ w1 + b1
    h = 0.5 * h * (1.0 + jax.lax.erf(h / jnp.sqrt(2.0)))
    return h @ w2 + b2


if __name__ == "__main__":
    # --- Small shapes, exact f32 path (matches torch.nn.GELU erf semantics) ---
    key = jax.random.PRNGKey(0)
    batch, seq, dim, hidden_dim = 2, 8, 32, 64
    kx, kp = jax.random.split(key)
    x = jax.random.normal(kx, (batch, seq, dim), dtype=jnp.float32)
    w1, b1, w2, b2 = init_params(kp, dim, hidden_dim)

    out = feed_forward(x, w1, b1, w2, b2, compute_dtype=jnp.float32)
    out = jax.block_until_ready(out)
    ref = _ref_ffn(x, w1, b1, w2, b2)
    assert jnp.allclose(out, ref, atol=1e-5, rtol=1e-5), "f32 path mismatch vs reference"

    # --- Larger shapes: M-tiling (grid of 4), default bf16-operand MXU path, hoisted
    #     weight formatting via prepare_params (no per-call weight cast/pad HBM passes) ---
    batch2, seq2, dim2, hidden2 = 2, 256, 128, 256
    kx2, kp2 = jax.random.split(jax.random.PRNGKey(1))
    x2 = jax.random.normal(kx2, (batch2, seq2, dim2), dtype=jnp.float32)
    raw2 = init_params(kp2, dim2, hidden2)
    w1_p, b1_p, w2_p, b2_p = prepare_params(*raw2, compute_dtype=jnp.bfloat16)

    out2 = feed_forward(x2, w1_p, b1_p, w2_p, b2_p, block_m=128)
    out2 = jax.block_until_ready(out2)
    ref2 = _ref_ffn(x2, *raw2)
    assert jnp.allclose(out2, ref2, atol=5e-2, rtol=5e-2), "bf16 tiled path mismatch vs reference"

    print("KERNEL_OK")
</pallas_src>

<mosaic_0001>
module attributes {stable_mosaic.version = 11 : i64} {
  func.func @_ffn_kernel(%arg0: i32, %arg1: memref<16x128xf32, #tpu.memory_space<vmem>>, %arg2: memref<128x128xf32, #tpu.memory_space<vmem>>, %arg3: memref<1x128xf32, #tpu.memory_space<vmem>>, %arg4: memref<128x128xf32, #tpu.memory_space<vmem>>, %arg5: memref<1x128xf32, #tpu.memory_space<vmem>>, %arg6: memref<16x128xf32, #tpu.memory_space<vmem>>) attributes {dimension_semantics = [#tpu.dimension_semantics<parallel>], iteration_bounds = array<i64: 1>, scalar_prefetch = 0 : i64, scratch_operands = 0 : i64, tpu.core_type = #tpu.core_type<tc>, window_params = [{transform_indices = @transform_0, window_bounds = array<i64: 16, 128>}, {pipeline_mode = #tpu.pipeline_mode<synchronous>, transform_indices = @transform_1, window_bounds = array<i64: 128, 128>}, {pipeline_mode = #tpu.pipeline_mode<synchronous>, transform_indices = @transform_2, window_bounds = array<i64: 1, 128>}, {pipeline_mode = #tpu.pipeline_mode<synchronous>, transform_indices = @transform_3, window_bounds = array<i64: 128, 128>}, {pipeline_mode = #tpu.pipeline_mode<synchronous>, transform_indices = @transform_4, window_bounds = array<i64: 1, 128>}, {transform_indices = @transform_5, window_bounds = array<i64: 16, 128>}]} {
    %c0 = arith.constant 0 : index
    %c0_0 = arith.constant 0 : index
    %0 = vector.load %arg1[%c0, %c0_0] : memref<16x128xf32, #tpu.memory_space<vmem>>, vector<16x128xf32>
    %c0_1 = arith.constant 0 : index
    %c0_2 = arith.constant 0 : index
    %1 = vector.load %arg2[%c0_1, %c0_2] : memref<128x128xf32, #tpu.memory_space<vmem>>, vector<128x128xf32>
    %cst = arith.constant dense<0.000000e+00> : vector<16x128xf32>
    %2 = tpu.matmul %0, %1, %cst {dimension_numbers = #tpu.dot_dimension_numbers<[1], [0], [0], [1], [0, 0, 1, 1], [], []>} : vector<16x128xf32>, vector<128x128xf32>, vector<16x128xf32> -> vector<16x128xf32>
    %c0_3 = arith.constant 0 : index
    %c0_4 = arith.constant 0 : index
    %3 = vector.load %arg3[%c0_3, %c0_4] : memref<1x128xf32, #tpu.memory_space<vmem>>, vector<1x128xf32>
    %4 = vector.broadcast %3 : vector<1x128xf32> to vector<16x128xf32>
    %5 = arith.addf %2, %4 : vector<16x128xf32>
    %cst_5 = arith.constant 5.000000e-01 : f32
    %6 = vector.broadcast %cst_5 : f32 to vector<16x128xf32>
    %7 = arith.mulf %6, %5 : vector<16x128xf32>
    %cst_6 = arith.constant 0.707106769 : f32
    %8 = vector.broadcast %cst_6 : f32 to vector<16x128xf32>
    %9 = arith.mulf %5, %8 : vector<16x128xf32>
    %10 = math.erf %9 : vector<16x128xf32>
    %cst_7 = arith.constant 1.000000e+00 : f32
    %11 = vector.broadcast %cst_7 : f32 to vector<16x128xf32>
    %12 = arith.addf %11, %10 : vector<16x128xf32>
    %13 = arith.mulf %7, %12 : vector<16x128xf32>
    %c0_8 = arith.constant 0 : index
    %c0_9 = arith.constant 0 : index
    %14 = vector.load %arg4[%c0_8, %c0_9] : memref<128x128xf32, #tpu.memory_space<vmem>>, vector<128x128xf32>
    %cst_10 = arith.constant dense<0.000000e+00> : vector<16x128xf32>
    %15 = tpu.matmul %13, %14, %cst_10 {dimension_numbers = #tpu.dot_dimension_numbers<[1], [0], [0], [1], [0, 0, 1, 1], [], []>} : vector<16x128xf32>, vector<128x128xf32>, vector<16x128xf32> -> vector<16x128xf32>
    %c0_11 = arith.constant 0 : index
    %c0_12 = arith.constant 0 : index
    %16 = vector.load %arg5[%c0_11, %c0_12] : memref<1x128xf32, #tpu.memory_space<vmem>>, vector<1x128xf32>
    %17 = vector.broadcast %16 : vector<1x128xf32> to vector<16x128xf32>
    %18 = arith.addf %15, %17 : vector<16x128xf32>
    %c0_13 = arith.constant 0 : index
    %c0_14 = arith.constant 0 : index
    %19 = vector.load %arg6[%c0_13, %c0_14] : memref<16x128xf32, #tpu.memory_space<vmem>>, vector<16x128xf32>
    tpu.vector_store %arg6[%c0_13, %c0_14], %18 {strides = array<i32>} : memref<16x128xf32, #tpu.memory_space<vmem>>, vector<16x128xf32>,
    return
  }
  func.func @transform_0(%arg0: i32) -> (i32, i32) {
    %c0_i32 = arith.constant 0 : i32
    %c0_i32_0 = arith.constant 0 : i32
    return %arg0, %c0_i32 : i32, i32
  }
  func.func @transform_1(%arg0: i32) -> (i32, i32) {
    %c0_i32 = arith.constant 0 : i32
    %c0_i32_0 = arith.constant 0 : i32
    %c0_i32_1 = arith.constant 0 : i32
    return %c0_i32, %c0_i32_0 : i32, i32
  }
  func.func @transform_2(%arg0: i32) -> (i32, i32) {
    %c0_i32 = arith.constant 0 : i32
    %c0_i32_0 = arith.constant 0 : i32
    %c0_i32_1 = arith.constant 0 : i32
    return %c0_i32, %c0_i32_0 : i32, i32
  }
  func.func @transform_3(%arg0: i32) -> (i32, i32) {
    %c0_i32 = arith.constant 0 : i32
    %c0_i32_0 = arith.constant 0 : i32
    %c0_i32_1 = arith.constant 0 : i32
    return %c0_i32, %c0_i32_0 : i32, i32
  }
  func.func @transform_4(%arg0: i32) -> (i32, i32) {
    %c0_i32 = arith.constant 0 : i32
    %c0_i32_0 = arith.constant 0 : i32
    %c0_i32_1 = arith.constant 0 : i32
    return %c0_i32, %c0_i32_0 : i32, i32
  }
  func.func @transform_5(%arg0: i32) -> (i32, i32) {
    %c0_i32 = arith.constant 0 : i32
    %c0_i32_0 = arith.constant 0 : i32
    return %arg0, %c0_i32 : i32, i32
  }
}

</mosaic_0001>

<bundles_post_ra>
// kernel: feed_forward.1
= control target key start
LH: loop header
LB: loop body
LE: loop exit
PB: predicated region body
PF: predicated region fallthrough
CT: control target
= control target key end

     0   :  { %s554_s1 = inlined_call_operand.vmem [shape: f32[128,128], index: 1, kind: input, shape index: {}]   ;;  %s555_s0 = inlined_call_operand.vmem [shape: f32[16,128], index: 0, kind: input, shape index: {}]   ;;  %s556_s3 = inlined_call_operand.vmem [shape: f32[128,128], index: 3, kind: input, shape index: {}]   ;;  %s557_s2 = inlined_call_operand.vmem [shape: f32[1,128], index: 2, kind: input, shape index: {}]   ;;  %s558_s4 = inlined_call_operand.vmem [shape: f32[1,128], index: 4, kind: input, shape index: {}]   ;;  %s559_s5 = inlined_call_operand.vmem [shape: f32[16,128], index: 5, kind: output, shape index: {}]  }
   0x1   :  { %v22_v0 = vld [vmem:[%s554_s1] sm:$0xff]  ;;  %v23_v1 = vld [vmem:[%s554_s1 + $0x8] sm:$0xff]  ;;  %v24_v2 = vld [vmem:[%s554_s1 + $0x10] sm:$0xff] }
   0x2   :  { %v342_v3 = vpack.c.bf16 %v23_v1, %v22_v0  ;;  %v25_v4 = vld [vmem:[%s554_s1 + $0x18] sm:$0xff]  ;;  %v26_v6 = vld [vmem:[%s554_s1 + $0x20] sm:$0xff]  ;;  %v27_v7 = vld [vmem:[%s554_s1 + $0x28] sm:$0xff] }
   0x3   :  { %v346_v5 = vpack.c.bf16 %v25_v4, %v24_v2  ;;  %v350_v8 = vpack.c.bf16 %v27_v7, %v26_v6  ;;  %v28_v9 = vld [vmem:[%s554_s1 + $0x30] sm:$0xff]  ;;  %v29_v10 = vld [vmem:[%s554_s1 + $0x38] sm:$0xff]  ;;  %v20_v11 = vld [vmem:[%s555_s0] sm:$0xff] }
   0x4   :  { %343 = vmatprep.subr.bf16.mxu0 %v342_v3  ;;  %304 = vmatprep.mubr.f32.mxu0 %v20_v11  ;;  %v130_v12 = vld [vmem:[%s556_s3] sm:$0xff]  ;;  %v131_v13 = vld [vmem:[%s556_s3 + $0x8] sm:$0xff]  ;;  %v132_v14 = vld [vmem:[%s556_s3 + $0x10] sm:$0xff]  ;;  %v354_v20 = vpack.c.bf16 %v29_v10, %v28_v9 }
   0x5   :  { %345 = vmatpush3.bf16.msra.mxu0 %v342_v3  ;;  %v374_v15 = vpack.c.bf16 %v131_v13, %v130_v12  ;;  %v133_v16 = vld [vmem:[%s556_s3 + $0x18] sm:$0xff]  ;;  %v134_v18 = vld [vmem:[%s556_s3 + $0x20] sm:$0xff]  ;;  %v135_v19 = vld [vmem:[%s556_s3 + $0x28] sm:$0xff] }
   0x6   :  { %347 = vmatprep.subr.bf16.mxu0 %v346_v5  ;;  %v378_v17 = vpack.c.bf16 %v133_v16, %v132_v14  ;;  %v30_v21 = vld [vmem:[%s554_s1 + $0x40] sm:$0xff]  ;;  %v31_v22 = vld [vmem:[%s554_s1 + $0x48] sm:$0xff]  ;;  %v382_v23 = vpack.c.bf16 %v135_v19, %v134_v18  ;;  %v32_v25 = vld [vmem:[%s554_s1 + $0x50] sm:$0xff] }
   0x7   :  { %375 = vmatprep.subr.bf16.mxu1 %v374_v15  ;;  %v358_v24 = vpack.c.bf16 %v31_v22, %v30_v21  ;;  %v33_v26 = vld [vmem:[%s554_s1 + $0x58] sm:$0xff]  ;;  %v34_v28 = vld [vmem:[%s554_s1 + $0x60] sm:$0xff]  ;;  %v35_v29 = vld [vmem:[%s554_s1 + $0x68] sm:$0xff] }
   0x8   :  { %377 = vmatpush3.bf16.msra.mxu1 %v374_v15  ;;  %v362_v27 = vpack.c.bf16 %v33_v26, %v32_v25  ;;  %v366_v30 = vpack.c.bf16 %v35_v29, %v34_v28  ;;  %v36_v31 = vld [vmem:[%s554_s1 + $0x70] sm:$0xff]  ;;  %v37_v32 = vld [vmem:[%s554_s1 + $0x78] sm:$0xff]  ;;  %v21_v34 = vld [vmem:[%s555_s0 + $0x8] sm:$0xff] }
   0x9   :  { %349 = vmatpush3.bf16.msra.mxu0 %v346_v5  ;;  %379 = vmatprep.subr.bf16.mxu1 %v378_v17  ;;  %v370_v33 = vpack.c.bf16 %v37_v32, %v36_v31  ;;  %v136_v35 = vld [vmem:[%s556_s3 + $0x30] sm:$0xff]  ;;  %v137_v36 = vld [vmem:[%s556_s3 + $0x38] sm:$0xff]  ;;  %v138_v38 = vld [vmem:[%s556_s3 + $0x40] sm:$0xff] }
   0xa   :  { %351 = vmatprep.subr.bf16.mxu0 %v350_v8  ;;  %v386_v37 = vpack.c.bf16 %v137_v36, %v136_v35  ;;  %v139_v39 = vld [vmem:[%s556_s3 + $0x48] sm:$0xff]  ;;  %v140_v41 = vld [vmem:[%s556_s3 + $0x50] sm:$0xff]  ;;  %v141_v42 = vld [vmem:[%s556_s3 + $0x58] sm:$0xff] }
   0xb   :  { %v390_v40 = vpack.c.bf16 %v139_v39, %v138_v38  ;;  %v394_v43 = vpack.c.bf16 %v141_v42, %v140_v41  ;;  %v142_v44 = vld [vmem:[%s556_s3 + $0x60] sm:$0xff]  ;;  %v143_v45 = vld [vmem:[%s556_s3 + $0x68] sm:$0xff]  ;;  %v144_v47 = vld [vmem:[%s556_s3 + $0x70] sm:$0xff] }
   0xc   :  { %381 = vmatpush3.bf16.msra.mxu1 %v378_v17  ;;  %v398_v46 = vpack.c.bf16 %v143_v45, %v142_v44  ;;  %v145_v48 = vld [vmem:[%s556_s3 + $0x78] sm:$0xff]  ;;  %v234_v50 = vld [vmem:[%s557_s2] ss:$0 sm:$0xff] }
   0xd   :  { %353 = vmatpush3.bf16.msra.mxu0 %v350_v8  ;;  %383 = vmatprep.subr.bf16.mxu1 %v382_v23  ;;  %v402_v49 = vpack.c.bf16 %v145_v48, %v144_v47  ;;  %v235_v1 = vld [vmem:[%s558_s4] ss:$0 sm:$0xff] }
   0xe   :  { %355 = vmatprep.subr.bf16.mxu0 %v354_v20 }
  0x10   :  { %385 = vmatpush3.bf16.msra.mxu1 %v382_v23 }
  0x11   :  { %357 = vmatpush3.bf16.msra.mxu0 %v354_v20  ;;  %387 = vmatprep.subr.bf16.mxu1 %v386_v37 }
  0x12   :  { %359 = vmatprep.subr.bf16.mxu0 %v358_v24 }
  0x14   :  { %389 = vmatpush3.bf16.msra.mxu1 %v386_v37 }
  0x15   :  { %361 = vmatpush3.bf16.msra.mxu0 %v358_v24  ;;  %391 = vmatprep.subr.bf16.mxu1 %v390_v40 }
  0x16   :  { %363 = vmatprep.subr.bf16.mxu0 %v362_v27 }
  0x18   :  { %393 = vmatpush3.bf16.msra.mxu1 %v390_v40 }
  0x19   :  { %365 = vmatpush3.bf16.msra.mxu0 %v362_v27  ;;  %395 = vmatprep.subr.bf16.mxu1 %v394_v43 }
  0x1a   :  { %367 = vmatprep.subr.bf16.mxu0 %v366_v30 }
  0x1c   :  { %397 = vmatpush3.bf16.msra.mxu1 %v394_v43 }
  0x1d   :  { %369 = vmatpush3.bf16.msra.mxu0 %v366_v30  ;;  %399 = vmatprep.subr.bf16.mxu1 %v398_v46 }
  0x1e   :  { %371 = vmatprep.subr.bf16.mxu0 %v370_v33 }
  0x20   :  { %401 = vmatpush3.bf16.msra.mxu1 %v398_v46 }
  0x21   :  { %373 = vmatpush3.bf16.msra.mxu0 %v370_v33  ;;  %403 = vmatprep.subr.bf16.mxu1 %v402_v49 }
  0x24   :  { %305 = vmatmul.mubr.f32.vlgmr.msra.gmra.mrb[0].mxu0 %v21_v34  ;;  %405 = vmatpush3.bf16.msra.mxu1 %v402_v49 }
  0xf7   :  { %v306_v51 = vpop.f32.mrb[0].mxu0 }
  0xf8   :  { %v117_v52 = vadd.f32 %v306_v51, %v234_v50  ;;  %v111_v53 = vpop.f32.mrb[1].mxu0 }
  0xf9   :  { %v112_v54 = vadd.f32 %v234_v50, %v111_v53 }
  0xfa   :  { %v123_v55 = vmul.f32 0.70710677, %v117_v52  ;;  %v121_v62 = vmul.f32 0.5, %v117_v52 }
  0xfb   :  { %v122_v56 = vmul.f32 0.70710677, %v112_v54  ;;  %v120_v60 = vmul.f32 0.5, %v112_v54 }
  0xfc   :  { %406 = verf.f32 %v123_v55 }
  0xfd   :  { %408 = verf.f32 %v122_v56 }
 0x106   :  { %v407_v57 = vpop.eup %406 }
 0x107   :  { %v409_v58 = vpop.eup %408  ;;  %v127_v59 = vadd.f32 1.0, %v407_v57 }
 0x108   :  { %v126_v61 = vadd.f32 1.0, %v409_v58 }
 0x109   :  { %v129_v0 = vmul.f32 %v127_v59, %v121_v62 }
 0x10a   :  { %v128_v63 = vmul.f32 %v126_v61, %v120_v60 }
 0x10c   :  { %339 = vmatprep.mubr.f32.mxu1 %v128_v63 }
 0x10d   :  { %340 = vmatmul.mubr.f32.vlgmr.msra.gmra.mrb[0].mxu1 %v129_v0 }
 0x1e0   :  { %v341_v2 = vpop.f32.mrb[0].mxu1 }
 0x1e1   :  { %v225_v3 = vadd.f32 %v341_v2, %v235_v1  ;;  %v219_v4 = vpop.f32.mrb[1].mxu1 }
 0x1e2   :  { %v220_v5 = vadd.f32 %v235_v1, %v219_v4 }
 0x1e3   :  { %229 = vst [vmem:[%s559_s5 + $0x8] sm:$0xff] %v225_v3 }
 0x1e4   :  { %228 = vst [vmem:[%s559_s5] sm:$0xff] %v220_v5 }

</bundles_post_ra>
